<compile_context>
chip_gen: v5e
topology: v5e:2x2
jax: 0.10.0
libtpu: 0.0.40
codegen_flags: <defaults>
</compile_context>

<pallas_src>
import jax
import jax.numpy as jnp
from jax import lax
from jax.experimental import pallas as pl
from jax.experimental.pallas import tpu as pltpu


def _sigmoid(x):
    # exp + approx reciprocal both live on the EUP slot (free vs. VPU divide).
    return pl.reciprocal(1.0 + jnp.exp(-x), approx=True)


def _softmax_lanes(x):
    # softmax over the last (lane / HW) axis, rows independent.
    x = x - jnp.max(x, axis=-1, keepdims=True)
    e = jnp.exp(x)
    return e * pl.reciprocal(jnp.sum(e, axis=-1, keepdims=True), approx=True)


def psa_kernel(x_ref,
               wr_ref,                       # fused [conv_v_right; conv_q_right]: (IP+1, C) bf16
               w1_ref, b1_ref, ln_g_ref, ln_b_ref,
               w2_ref, b2_ref,
               wl_ref,                       # fused [conv_q_left; conv_v_left]:   (2*IP, C) bf16
               o_ref):
    ip = wl_ref.shape[0] // 2

    x = x_ref[0]                              # (C, HW) f32 for the current batch element
    x_bf = x.astype(jnp.bfloat16)

    # ---------------- spatial_pool ----------------
    # One MXU pass for both 1x1 convs (bf16 operands, f32 accumulate).
    right = jnp.dot(wr_ref[...], x_bf, preferred_element_type=jnp.float32)   # (IP+1, HW)
    input_x = right[:ip]                      # conv_v_right(x): (IP, HW)
    cm = _softmax_lanes(right[ip:ip + 1])     # conv_q_right(x) + softmax over HW: (1, HW)

    # context = input_x @ cm^T  (contract HW on the MXU) -> (IP, 1)
    context = lax.dot_general(input_x, cm,
                              dimension_numbers=(((1,), (1,)), ((), ())),
                              preferred_element_type=jnp.float32)

    # conv_up: 1x1(IP->IP/4)+bias, LayerNorm([IP/4,1,1]), ReLU, 1x1(IP/4->planes)+bias
    h = jnp.dot(w1_ref[...], context, preferred_element_type=jnp.float32) + b1_ref[...]   # (IPr, 1)
    mu = jnp.mean(h, axis=0, keepdims=True)
    var = jnp.mean((h - mu) * (h - mu), axis=0, keepdims=True)
    h = (h - mu) * lax.rsqrt(var + 1e-5)
    h = h * ln_g_ref[...] + ln_b_ref[...]
    h = jnp.maximum(h, 0.0)
    ch = jnp.dot(w2_ref[...], h, preferred_element_type=jnp.float32) + b2_ref[...]        # (C, 1)

    out1 = x * _sigmoid(ch)                   # channel gate, broadcast over lanes: (C, HW)

    # ---------------- channel_pool ----------------
    # One MXU pass for both 1x1 convs on the gated activation.
    left = jnp.dot(wl_ref[...], out1.astype(jnp.bfloat16),
                   preferred_element_type=jnp.float32)                        # (2*IP, HW)
    g_x = left[:ip]                           # conv_q_left(out1):  (IP, HW)
    theta = _softmax_lanes(left[ip:])         # conv_v_left(out1) + softmax over HW

    avg_x = jnp.mean(g_x, axis=1, keepdims=True)                              # (IP, 1)

    # ctx_sp = avg_x^T @ theta  (contract IP on the MXU) -> (1, HW)
    ctx_sp = lax.dot_general(avg_x, theta,
                             dimension_numbers=(((0,), (0,)), ((), ())),
                             preferred_element_type=jnp.float32)

    o_ref[0] = out1 * _sigmoid(ctx_sp)        # spatial gate, broadcast over sublanes


def _vmem_budget_bytes(C, HW, IP):
    f32 = 4
    tile = C * HW * f32
    est = 4 * tile                       # x + out tiles, double-buffered by the pipeline
    est += 2 * tile                      # out1 (f32) + bf16 copies of x / out1
    est += (3 * IP + 1) * HW * f32       # fused conv outputs (right + left)
    est = int(est * 1.5) + (2 << 20)     # headroom + weights/scratch
    return max(min(est, 64 * 1024 * 1024), 32 * 1024 * 1024)


def psa_s_forward(x_nchw, params):
    """x_nchw: (B, C, H, W) float32. Returns (B, C, H, W) float32."""
    B, C, H, W = x_nchw.shape
    HW = H * W
    IP = params["wvr"].shape[0]          # inter_planes
    IPr = params["w1"].shape[0]          # inter_planes // 4
    planes = params["w2"].shape[0]

    # Free reshape only — no transpose passes over HBM.
    x_seq = x_nchw.reshape(B, C, HW)

    # Fuse the 1x1-conv weights that share an LHS and pre-cast them to bf16.
    w_right = jnp.concatenate([params["wvr"], params["wqr"]], axis=0).astype(jnp.bfloat16)  # (IP+1, C)
    w_left = jnp.concatenate([params["wql"], params["wvl"]], axis=0).astype(jnp.bfloat16)   # (2*IP, C)

    def full(shape):
        return pl.BlockSpec(shape, lambda b, _s=shape: (0,) * len(_s))

    out_seq = pl.pallas_call(
        psa_kernel,
        out_shape=jax.ShapeDtypeStruct((B, C, HW), jnp.float32),
        grid=(B,),
        in_specs=[
            pl.BlockSpec((1, C, HW), lambda b: (b, 0, 0)),   # x
            full((IP + 1, C)),       # fused conv_v_right | conv_q_right
            full((IPr, IP)),         # conv_up[0] weight
            full((IPr, 1)),          # conv_up[0] bias
            full((IPr, 1)),          # LayerNorm gamma
            full((IPr, 1)),          # LayerNorm beta
            full((planes, IPr)),     # conv_up[3] weight
            full((planes, 1)),       # conv_up[3] bias
            full((2 * IP, C)),       # fused conv_q_left | conv_v_left
        ],
        out_specs=pl.BlockSpec((1, C, HW), lambda b: (b, 0, 0)),
        compiler_params=pltpu.CompilerParams(
            dimension_semantics=("parallel",),
            vmem_limit_bytes=_vmem_budget_bytes(C, HW, IP)),
    )(x_seq, w_right,
      params["w1"], params["b1"], params["ln_g"], params["ln_b"],
      params["w2"], params["b2"],
      w_left)

    return out_seq.reshape(B, C, H, W)


def make_params(key, inplanes, planes):
    """Deterministic synthetic init matching the module's parameter shapes.

    1x1-conv weights stored as (Cout, Cin) so conv == left-matmul on (C, HW).
    """
    inter = planes // 2
    ratio = 4
    ipr = inter // ratio
    ks = jax.random.split(key, 8)

    def kaiming(k, cout, cin):
        std = (2.0 / cin) ** 0.5          # kaiming-normal, fan_in, 1x1 kernel
        return (std * jax.random.normal(k, (cout, cin))).astype(jnp.float32)

    return {
        "wqr": kaiming(ks[0], 1, inplanes),        # conv_q_right
        "wvr": kaiming(ks[1], inter, inplanes),    # conv_v_right
        "w1":  kaiming(ks[2], ipr, inter),         # conv_up[0]
        "b1":  jnp.zeros((ipr, 1), jnp.float32),
        "ln_g": jnp.ones((ipr, 1), jnp.float32),   # LayerNorm weight
        "ln_b": jnp.zeros((ipr, 1), jnp.float32),  # LayerNorm bias
        "w2":  kaiming(ks[3], planes, ipr),        # conv_up[3]
        "b2":  jnp.zeros((planes, 1), jnp.float32),
        "wql": kaiming(ks[4], inter, inplanes),    # conv_q_left
        "wvl": kaiming(ks[5], inter, inplanes),    # conv_v_left
    }


if __name__ == "__main__":
    # Small shapes: batch=2, channels=16 (inter_planes=8, inter//4=2), 16x16 spatial (HW=256).
    B, C, H, W = 2, 16, 16, 16
    inplanes = planes = C

    key = jax.random.PRNGKey(0)
    kx, kp = jax.random.split(key)
    x = jax.random.normal(kx, (B, C, H, W), dtype=jnp.float32)
    params = make_params(kp, inplanes, planes)

    out = psa_s_forward(x, params)
    jax.block_until_ready(out)
    assert out.shape == (B, C, H, W)
    assert bool(jnp.all(jnp.isfinite(out)))
    print("KERNEL_OK")
</pallas_src>

<mosaic_0001>
module attributes {stable_mosaic.version = 11 : i64} {
  func.func @psa_kernel(%arg0: i32, %arg1: memref<1x16x256xf32, #tpu.memory_space<vmem>>, %arg2: memref<9x16xbf16, #tpu.memory_space<vmem>>, %arg3: memref<2x8xf32, #tpu.memory_space<vmem>>, %arg4: memref<2x1xf32, #tpu.memory_space<vmem>>, %arg5: memref<2x1xf32, #tpu.memory_space<vmem>>, %arg6: memref<2x1xf32, #tpu.memory_space<vmem>>, %arg7: memref<16x2xf32, #tpu.memory_space<vmem>>, %arg8: memref<16x1xf32, #tpu.memory_space<vmem>>, %arg9: memref<16x16xbf16, #tpu.memory_space<vmem>>, %arg10: memref<1x16x256xf32, #tpu.memory_space<vmem>>) attributes {dimension_semantics = [#tpu.dimension_semantics<parallel>], iteration_bounds = array<i64: 2>, scalar_prefetch = 0 : i64, scratch_operands = 0 : i64, tpu.core_type = #tpu.core_type<tc>, window_params = [{transform_indices = @transform_0, window_bounds = array<i64: 1, 16, 256>}, {pipeline_mode = #tpu.pipeline_mode<synchronous>, transform_indices = @transform_1, window_bounds = array<i64: 9, 16>}, {pipeline_mode = #tpu.pipeline_mode<synchronous>, transform_indices = @transform_2, window_bounds = array<i64: 2, 8>}, {pipeline_mode = #tpu.pipeline_mode<synchronous>, transform_indices = @transform_3, window_bounds = array<i64: 2, 1>}, {pipeline_mode = #tpu.pipeline_mode<synchronous>, transform_indices = @transform_4, window_bounds = array<i64: 2, 1>}, {pipeline_mode = #tpu.pipeline_mode<synchronous>, transform_indices = @transform_5, window_bounds = array<i64: 2, 1>}, {pipeline_mode = #tpu.pipeline_mode<synchronous>, transform_indices = @transform_6, window_bounds = array<i64: 16, 2>}, {pipeline_mode = #tpu.pipeline_mode<synchronous>, transform_indices = @transform_7, window_bounds = array<i64: 16, 1>}, {pipeline_mode = #tpu.pipeline_mode<synchronous>, transform_indices = @transform_8, window_bounds = array<i64: 16, 16>}, {transform_indices = @transform_9, window_bounds = array<i64: 1, 16, 256>}]} {
    %c0 = arith.constant 0 : index
    %c0_0 = arith.constant 0 : index
    %c0_1 = arith.constant 0 : index
    %0 = vector.load %arg1[%c0, %c0_0, %c0_1] : memref<1x16x256xf32, #tpu.memory_space<vmem>>, vector<1x16x256xf32>
    %1 = vector.shape_cast %0 : vector<1x16x256xf32> to vector<16x256xf32>
    %2 = arith.truncf %1 : vector<16x256xf32> to vector<16x256xbf16>
    %c0_2 = arith.constant 0 : index
    %c0_3 = arith.constant 0 : index
    %3 = vector.load %arg2[%c0_2, %c0_3] : memref<9x16xbf16, #tpu.memory_space<vmem>>, vector<9x16xbf16>
    %cst = arith.constant dense<0.000000e+00> : vector<9x256xf32>
    %4 = tpu.matmul %3, %2, %cst {dimension_numbers = #tpu.dot_dimension_numbers<[1], [0], [0], [1], [0, 0, 1, 1], [], []>} : vector<9x16xbf16>, vector<16x256xbf16>, vector<9x256xf32> -> vector<9x256xf32>
    %5 = vector.extract_strided_slice %4 {offsets = [0, 0], sizes = [8, 256], strides = [1, 1]} : vector<9x256xf32> to vector<8x256xf32>
    %6 = vector.extract_strided_slice %4 {offsets = [8, 0], sizes = [1, 256], strides = [1, 1]} : vector<9x256xf32> to vector<1x256xf32>
    %cst_4 = arith.constant dense<0xFF800000> : vector<1xf32>
    %7 = vector.multi_reduction <maximumf>, %6, %cst_4 [1] : vector<1x256xf32> to vector<1xf32>
    %8 = vector.shape_cast %7 : vector<1xf32> to vector<1x1xf32>
    %9 = vector.broadcast %8 : vector<1x1xf32> to vector<1x256xf32>
    %10 = arith.subf %6, %9 : vector<1x256xf32>
    %11 = math.exp %10 : vector<1x256xf32>
    %cst_5 = arith.constant dense<0.000000e+00> : vector<1xf32>
    %12 = vector.multi_reduction <add>, %11, %cst_5 [1] : vector<1x256xf32> to vector<1xf32>
    %13 = vector.shape_cast %12 : vector<1xf32> to vector<1x1xf32>
    %14 = tpu.reciprocal %13 {approx = true} : vector<1x1xf32> -> vector<1x1xf32>
    %15 = vector.broadcast %14 : vector<1x1xf32> to vector<1x256xf32>
    %16 = arith.mulf %11, %15 : vector<1x256xf32>
    %cst_6 = arith.constant dense<0.000000e+00> : vector<8x1xf32>
    %17 = tpu.matmul %5, %16, %cst_6 {dimension_numbers = #tpu.dot_dimension_numbers<[1], [1], [0], [0], [0, 0, 1, 0], [], []>} : vector<8x256xf32>, vector<1x256xf32>, vector<8x1xf32> -> vector<8x1xf32>
    %c0_7 = arith.constant 0 : index
    %c0_8 = arith.constant 0 : index
    %18 = vector.load %arg3[%c0_7, %c0_8] : memref<2x8xf32, #tpu.memory_space<vmem>>, vector<2x8xf32>
    %cst_9 = arith.constant dense<0.000000e+00> : vector<2x1xf32>
    %19 = tpu.matmul %18, %17, %cst_9 {dimension_numbers = #tpu.dot_dimension_numbers<[1], [0], [0], [1], [0, 0, 1, 1], [], []>} : vector<2x8xf32>, vector<8x1xf32>, vector<2x1xf32> -> vector<2x1xf32>
    %c0_10 = arith.constant 0 : index
    %c0_11 = arith.constant 0 : index
    %20 = vector.load %arg4[%c0_10, %c0_11] : memref<2x1xf32, #tpu.memory_space<vmem>>, vector<2x1xf32>
    %21 = arith.addf %19, %20 : vector<2x1xf32>
    %cst_12 = arith.constant dense<0.000000e+00> : vector<1xf32>
    %22 = vector.multi_reduction <add>, %21, %cst_12 [0] : vector<2x1xf32> to vector<1xf32>
    %23 = vector.shape_cast %22 : vector<1xf32> to vector<1x1xf32>
    %cst_13 = arith.constant 2.000000e+00 : f32
    %24 = vector.broadcast %cst_13 : f32 to vector<1x1xf32>
    %25 = arith.divf %23, %24 : vector<1x1xf32>
    %26 = vector.broadcast %25 : vector<1x1xf32> to vector<2x1xf32>
    %27 = arith.subf %21, %26 : vector<2x1xf32>
    %28 = vector.broadcast %25 : vector<1x1xf32> to vector<2x1xf32>
    %29 = arith.subf %21, %28 : vector<2x1xf32>
    %30 = arith.mulf %27, %29 : vector<2x1xf32>
    %cst_14 = arith.constant dense<0.000000e+00> : vector<1xf32>
    %31 = vector.multi_reduction <add>, %30, %cst_14 [0] : vector<2x1xf32> to vector<1xf32>
    %32 = vector.shape_cast %31 : vector<1xf32> to vector<1x1xf32>
    %cst_15 = arith.constant 2.000000e+00 : f32
    %33 = vector.broadcast %cst_15 : f32 to vector<1x1xf32>
    %34 = arith.divf %32, %33 : vector<1x1xf32>
    %35 = vector.broadcast %25 : vector<1x1xf32> to vector<2x1xf32>
    %36 = arith.subf %21, %35 : vector<2x1xf32>
    %cst_16 = arith.constant 9.99999974E-6 : f32
    %37 = vector.broadcast %cst_16 : f32 to vector<1x1xf32>
    %38 = arith.addf %34, %37 : vector<1x1xf32>
    %39 = math.rsqrt %38 : vector<1x1xf32>
    %40 = vector.broadcast %39 : vector<1x1xf32> to vector<2x1xf32>
    %41 = arith.mulf %36, %40 : vector<2x1xf32>
    %c0_17 = arith.constant 0 : index
    %c0_18 = arith.constant 0 : index
    %42 = vector.load %arg5[%c0_17, %c0_18] : memref<2x1xf32, #tpu.memory_space<vmem>>, vector<2x1xf32>
    %43 = arith.mulf %41, %42 : vector<2x1xf32>
    %c0_19 = arith.constant 0 : index
    %c0_20 = arith.constant 0 : index
    %44 = vector.load %arg6[%c0_19, %c0_20] : memref<2x1xf32, #tpu.memory_space<vmem>>, vector<2x1xf32>
    %45 = arith.addf %43, %44 : vector<2x1xf32>
    %cst_21 = arith.constant 0.000000e+00 : f32
    %46 = vector.broadcast %cst_21 : f32 to vector<2x1xf32>
    %47 = arith.maximumf %45, %46 : vector<2x1xf32>
    %c0_22 = arith.constant 0 : index
    %c0_23 = arith.constant 0 : index
    %48 = vector.load %arg7[%c0_22, %c0_23] : memref<16x2xf32, #tpu.memory_space<vmem>>, vector<16x2xf32>
    %cst_24 = arith.constant dense<0.000000e+00> : vector<16x1xf32>
    %49 = tpu.matmul %48, %47, %cst_24 {dimension_numbers = #tpu.dot_dimension_numbers<[1], [0], [0], [1], [0, 0, 1, 1], [], []>} : vector<16x2xf32>, vector<2x1xf32>, vector<16x1xf32> -> vector<16x1xf32>
    %c0_25 = arith.constant 0 : index
    %c0_26 = arith.constant 0 : index
    %50 = vector.load %arg8[%c0_25, %c0_26] : memref<16x1xf32, #tpu.memory_space<vmem>>, vector<16x1xf32>
    %51 = arith.addf %49, %50 : vector<16x1xf32>
    %cst_27 = arith.constant 0.000000e+00 : f32
    %52 = vector.broadcast %cst_27 : f32 to vector<16x1xf32>
    %53 = arith.subf %52, %51 : vector<16x1xf32>
    %54 = math.exp %53 : vector<16x1xf32>
    %cst_28 = arith.constant 1.000000e+00 : f32
    %55 = vector.broadcast %cst_28 : f32 to vector<16x1xf32>
    %56 = arith.addf %55, %54 : vector<16x1xf32>
    %57 = tpu.reciprocal %56 {approx = true} : vector<16x1xf32> -> vector<16x1xf32>
    %58 = vector.broadcast %57 : vector<16x1xf32> to vector<16x256xf32>
    %59 = arith.mulf %1, %58 : vector<16x256xf32>
    %c0_29 = arith.constant 0 : index
    %c0_30 = arith.constant 0 : index
    %60 = vector.load %arg9[%c0_29, %c0_30] : memref<16x16xbf16, #tpu.memory_space<vmem>>, vector<16x16xbf16>
    %61 = arith.truncf %59 : vector<16x256xf32> to vector<16x256xbf16>
    %cst_31 = arith.constant dense<0.000000e+00> : vector<16x256xf32>
    %62 = tpu.matmul %60, %61, %cst_31 {dimension_numbers = #tpu.dot_dimension_numbers<[1], [0], [0], [1], [0, 0, 1, 1], [], []>} : vector<16x16xbf16>, vector<16x256xbf16>, vector<16x256xf32> -> vector<16x256xf32>
    %63 = vector.extract_strided_slice %62 {offsets = [0, 0], sizes = [8, 256], strides = [1, 1]} : vector<16x256xf32> to vector<8x256xf32>
    %64 = vector.extract_strided_slice %62 {offsets = [8, 0], sizes = [8, 256], strides = [1, 1]} : vector<16x256xf32> to vector<8x256xf32>
    %cst_32 = arith.constant dense<0xFF800000> : vector<8xf32>
    %65 = vector.multi_reduction <maximumf>, %64, %cst_32 [1] : vector<8x256xf32> to vector<8xf32>
    %66 = vector.shape_cast %65 : vector<8xf32> to vector<8x1xf32>
    %67 = vector.broadcast %66 : vector<8x1xf32> to vector<8x256xf32>
    %68 = arith.subf %64, %67 : vector<8x256xf32>
    %69 = math.exp %68 : vector<8x256xf32>
    %cst_33 = arith.constant dense<0.000000e+00> : vector<8xf32>
    %70 = vector.multi_reduction <add>, %69, %cst_33 [1] : vector<8x256xf32> to vector<8xf32>
    %71 = vector.shape_cast %70 : vector<8xf32> to vector<8x1xf32>
    %72 = tpu.reciprocal %71 {approx = true} : vector<8x1xf32> -> vector<8x1xf32>
    %73 = vector.broadcast %72 : vector<8x1xf32> to vector<8x256xf32>
    %74 = arith.mulf %69, %73 : vector<8x256xf32>
    %cst_34 = arith.constant dense<0.000000e+00> : vector<8xf32>
    %75 = vector.multi_reduction <add>, %63, %cst_34 [1] : vector<8x256xf32> to vector<8xf32>
    %76 = vector.shape_cast %75 : vector<8xf32> to vector<8x1xf32>
    %cst_35 = arith.constant 2.560000e+02 : f32
    %77 = vector.broadcast %cst_35 : f32 to vector<8x1xf32>
    %78 = arith.divf %76, %77 : vector<8x1xf32>
    %cst_36 = arith.constant dense<0.000000e+00> : vector<1x256xf32>
    %79 = tpu.matmul %78, %74, %cst_36 {dimension_numbers = #tpu.dot_dimension_numbers<[0], [0], [1], [1], [0, 1, 1, 1], [], []>} : vector<8x1xf32>, vector<8x256xf32>, vector<1x256xf32> -> vector<1x256xf32>
    %cst_37 = arith.constant 0.000000e+00 : f32
    %80 = vector.broadcast %cst_37 : f32 to vector<1x256xf32>
    %81 = arith.subf %80, %79 : vector<1x256xf32>
    %82 = math.exp %81 : vector<1x256xf32>
    %cst_38 = arith.constant 1.000000e+00 : f32
    %83 = vector.broadcast %cst_38 : f32 to vector<1x256xf32>
    %84 = arith.addf %83, %82 : vector<1x256xf32>
    %85 = tpu.reciprocal %84 {approx = true} : vector<1x256xf32> -> vector<1x256xf32>
    %86 = vector.broadcast %85 : vector<1x256xf32> to vector<16x256xf32>
    %87 = arith.mulf %59, %86 : vector<16x256xf32>
    %c0_39 = arith.constant 0 : index
    %c0_40 = arith.constant 0 : index
    %c0_41 = arith.constant 0 : index
    %88 = vector.load %arg10[%c0_39, %c0_40, %c0_41] : memref<1x16x256xf32, #tpu.memory_space<vmem>>, vector<1x16x256xf32>
    %89 = vector.shape_cast %88 : vector<1x16x256xf32> to vector<16x256xf32>
    %90 = vector.shape_cast %87 : vector<16x256xf32> to vector<1x16x256xf32>
    tpu.vector_store %arg10[%c0_39, %c0_40, %c0_41], %90 {strides = array<i32>} : memref<1x16x256xf32, #tpu.memory_space<vmem>>, vector<1x16x256xf32>,
    return
  }
  func.func @transform_0(%arg0: i32) -> (i32, i32, i32) {
    %c0_i32 = arith.constant 0 : i32
    %c0_i32_0 = arith.constant 0 : i32
    %c0_i32_1 = arith.constant 0 : i32
    return %arg0, %c0_i32, %c0_i32_0 : i32, i32, i32
  }
  func.func @transform_1(%arg0: i32) -> (i32, i32) {
    %c0_i32 = arith.constant 0 : i32
    %c0_i32_0 = arith.constant 0 : i32
    %c0_i32_1 = arith.constant 0 : i32
    return %c0_i32, %c0_i32_0 : i32, i32
  }
  func.func @transform_2(%arg0: i32) -> (i32, i32) {
    %c0_i32 = arith.constant 0 : i32
    %c0_i32_0 = arith.constant 0 : i32
    %c0_i32_1 = arith.constant 0 : i32
    return %c0_i32, %c0_i32_0 : i32, i32
  }
  func.func @transform_3(%arg0: i32) -> (i32, i32) {
    %c0_i32 = arith.constant 0 : i32
    %c0_i32_0 = arith.constant 0 : i32
    %c0_i32_1 = arith.constant 0 : i32
    return %c0_i32, %c0_i32_0 : i32, i32
  }
  func.func @transform_4(%arg0: i32) -> (i32, i32) {
    %c0_i32 = arith.constant 0 : i32
    %c0_i32_0 = arith.constant 0 : i32
    %c0_i32_1 = arith.constant 0 : i32
    return %c0_i32, %c0_i32_0 : i32, i32
  }
  func.func @transform_5(%arg0: i32) -> (i32, i32) {
    %c0_i32 = arith.constant 0 : i32
    %c0_i32_0 = arith.constant 0 : i32
    %c0_i32_1 = arith.constant 0 : i32
    return %c0_i32, %c0_i32_0 : i32, i32
  }
  func.func @transform_6(%arg0: i32) -> (i32, i32) {
    %c0_i32 = arith.constant 0 : i32
    %c0_i32_0 = arith.constant 0 : i32
    %c0_i32_1 = arith.constant 0 : i32
    return %c0_i32, %c0_i32_0 : i32, i32
  }
  func.func @transform_7(%arg0: i32) -> (i32, i32) {
    %c0_i32 = arith.constant 0 : i32
    %c0_i32_0 = arith.constant 0 : i32
    %c0_i32_1 = arith.constant 0 : i32
    return %c0_i32, %c0_i32_0 : i32, i32
  }
  func.func @transform_8(%arg0: i32) -> (i32, i32) {
    %c0_i32 = arith.constant 0 : i32
    %c0_i32_0 = arith.constant 0 : i32
    %c0_i32_1 = arith.constant 0 : i32
    return %c0_i32, %c0_i32_0 : i32, i32
  }
  func.func @transform_9(%arg0: i32) -> (i32, i32, i32) {
    %c0_i32 = arith.constant 0 : i32
    %c0_i32_0 = arith.constant 0 : i32
    %c0_i32_1 = arith.constant 0 : i32
    return %arg0, %c0_i32, %c0_i32_0 : i32, i32, i32
  }
}

</mosaic_0001>

<bundles_post_ra>
// kernel: tpu_custom_call.1
= control target key start
LH: loop header
LB: loop body
LE: loop exit
PB: predicated region body
PF: predicated region fallthrough
CT: control target
= control target key end

     0   :  { %14 = vsyncpa [#allocation3], 0  ;;  %s1301_s0 = inlined_call_operand.hbm [shape: f32[2,16,256], index: 0, kind: input, shape index: {}]   ;;  %s1302_s1 = inlined_call_operand.vmem [shape: bf16[9,16], index: 1, kind: input, shape index: {}]   ;;  %s1303_s2 = inlined_call_operand.vmem [shape: f32[2,8], index: 2, kind: input, shape index: {}]   ;;  %s1304_s3 = inlined_call_operand.vmem [shape: f32[2,1], index: 3, kind: input, shape index: {}]   ;;  %s1305_s4 = inlined_call_operand.vmem [shape: f32[2,1], index: 4, kind: input, shape index: {}]   ;;  %s1306_s5 = inlined_call_operand.vmem [shape: f32[2,1], index: 5, kind: input, shape index: {}]   ;;  %s1307_s6 = inlined_call_operand.vmem [shape: f32[16,2], index: 6, kind: input, shape index: {}]   ;;  %s1308_s7 = inlined_call_operand.vmem [shape: f32[16,1], index: 7, kind: input, shape index: {}]   ;;  %s1309_s8 = inlined_call_operand.vmem [shape: bf16[16,16], index: 8, kind: input, shape index: {}]   ;;  %s1310_s9 = inlined_call_operand.hbm [shape: f32[2,16,256], index: 9, kind: output, shape index: {}]  }
   0x1   :  { %16 = vsyncpa [#allocation3 + $0x1], 0 }
   0x2   :  { %17 = vsyncpa [#allocation4], 0 }
   0x3   :  { %19 = vsyncpa [#allocation4 + $0x1], 0  ;;  %s1089_s30 = smov 0   ;;  %s1091_s10 = smov 0  }
   0x4   :  { %s1093_s11 = smov 0   ;;  %s1095_s12 = smov 0  }
   0x5 LB: > { %1314 = sst [smem:[#allocation8_spill]] %s1026_s11  ;;  %s1110_s13 = sadd.s32 4294967295, %s1030_s12   ;;  %s1030_s12 = sphi %s1095_s12, %s1323_s12   ;;  %s1026_s11 = sphi %s1093_s11, %s1325_s11   ;;  %s1022_s10 = sphi %s1091_s10, %s1327_s10   ;;  %s1018_s30 = sphi %s1089_s30, %s1326_s30  }
   0x6   : > { %s807_s14 = sadd.s32 4294967294, %s1030_s12   ;;  %s1114_s15 = sadd.s32 1, %s1030_s12  }
   0x7   : > { %1315 = sst [smem:[#allocation9_spill]] %s1114_s15  ;;  %s32_s16 = sadd.s32 1, %s1026_s11 }
   0x8   : > { %s29_s17 = ssub.s32 %s1030_s12, %s1114_s15  ;;  %p39_p0 = scmp.ne.s32.totalorder %s1026_s11, %s1022_s10 }
   0x9   : > { %p30_p1 = scmp.eq.s32.totalorder %s29_s17, 0  ;;  %p40_p2 = scmp.eq.s32.totalorder %s1030_s12, 0 }
   0xa   : > { %p45_p3 = scmp.ne.s32.totalorder %s1022_s10, %s1018_s30  ;;  %p46_p4 = scmp.eq.s32.totalorder %s1110_s13, 0 }
   0xb   : > { %s1126_s18 = scalar_select %p30_p1, %s1026_s11, %s32_s16  }
   0xc   : > { %p1128_p5 = por %p40_p2, %p39_p0  ;;  %p1132_p6 = por %p46_p4, %p45_p3 }
   0xd   : > { %1316 = sst [smem:[#allocation10_spill]] %s1126_s18  ;;  %p237_p7 = scmp.eq.s32.totalorder %s1110_s13, 1 }
   0xe   : > { %p243_p8 = scmp.eq.s32.totalorder %s807_s14, 1  ;;  %p855_p10 = scmp.lt.s32.totalorder %s1030_s12, 2 }
   0xf   : > { %p1139_p11 = por %p237_p7, %p39_p0  ;;  %s287_s23 = sand.u32 1, %s1026_s11  }
  0x10   : > { %p1143_p12 = por %p243_p8, %p45_p3  ;;  %s839_s24 = sshll.u32 %s1030_s12, 5 }
  0x11   : > { %s810_s25 = sshll.u32 %s287_s23, 5  ;;  %s296_s28 = scalar_lea.hbm %s1301_s0, %s839_s24 }
  0x12   : > { %s297_s29 = sshll.u32 %s296_s28, 4  ;;  %s291_s14 = scalar_lea.vmem [#allocation2], %s810_s25  ;;  %s298_s29 = int_to_ptr.hbm [resolvable:$true] %s297_s29 }
  0x13   : > { %s299_s16 = sshll.u32 %s291_s14, 4  ;;  %p1154_p13 = pnand %p855_p10, %p1128_p5  ;;  %s300_s16 = int_to_ptr.vmem [resolvable:$true] %s299_s16 }
  0x14   : > { %p813_p0 = scmp.ge.s32.totalorder %s1030_s12, 1  ;;  %p307_p1 = scmp.lt.s32.totalorder %s1030_s12, 3 }
  0x15   : > { %s288_s18 = scalar_lea.sflag [#allocation3], %s287_s23  ;;  %s934_s11 = sshra.s32 %s298_s29, 4  ;;  %s935_s11 = int_to_ptr.hbm [resolvable:$true] %s934_s11 }
  0x16   : > { %s936_s15 = scalar_lea.hbm %s935_s11, 32  ;;  %p938_p3 = pneg %p1154_p13 }
  0x17   : > { %p937_p2 = scmp.ne.s32.totalorder %s935_s11, %s936_s15  ;;  %s941_s19 = scalar_lea.hbm %s1301_s0, 64 }
  0x18   : > { %p942_p5 = scmp.lt.s32.totalorder %s935_s11, %s1301_s0  ;;  %p943_p8 = scmp.lt.s32.totalorder %s941_s19, %s936_s15 }
  0x19   : > { %p939_p4 = pnand %p938_p3, %p937_p2 }
  0x1a   : > { %p944_p10 = por %p943_p8, %p942_p5 }
  0x1b   : > { %p940_p7 = pneg %p939_p4 }
  0x1d   : > { %p945_p9 = pnand %p944_p10, %p940_p7 }
  0x1f   : > { %948 = shalt.err (!%p945_p9)
}
  0x20   : > { %s1032_s23 = smov 256   ;;  %s1033_s28 = smov 16  }
  0x21   : > { %850 = dma.hbm_to_vmem [thread:$0]  (!%p1154_p13), %s298_s29, 512, %s300_s16, %s288_s18, %s1032_s23, %s1032_s23, %s1033_s28  }
  0x22   : > { %p308_p2 = pnand %p813_p0, %p307_p1 }
  0x23   : > { %s1175_s14 = sand.u32 (!%p308_p2), 1, %s1022_s10  }
  0x24   : > { %311 = sbr.rel (%p308_p2) target bundleno = 1673 (0x689), region = 56  ;;  %s814_s11 = sshll.u32 (!%p308_p2), %s1175_s14, 5 }
  0x25   : > { %s314_s15 = scalar_lea.sflag (!%p308_p2), [#allocation3], %s1175_s14  ;;  %s317_s24 = scalar_lea.vmem (!%p308_p2), [#allocation2], %s814_s11 }
  0x29   : > { %1009 = dma.done.wait (%p1132_p6), %s314_s15, 512  }
  0x2a   : > { %1011 = vsyncadd (%p1132_p6), %s314_s15, 4294966784  ;;  %v1185_v0 = vld [vmem:[%s317_s24] sm:$0xff]  ;;  %v1187_v1 = vld [vmem:[%s317_s24 + $0x10] sm:$0xff]  ;;  %vm367_vm0 = vcmask 130048   ;;  %vm399_vm1 = vcmask 1040384   ;;  %vm428_vm2 = vcmask 64512  }
  0x2b   : > { %v1189_v2 = vld [vmem:[%s317_s24 + $0x8] sm:$0xff]  ;;  %v358_v3 = vpack.c.bf16 %v1187_v1, %v1185_v0  ;;  %v1193_v4 = vld [vmem:[%s317_s24 + $0x18] sm:$0xff]  ;;  %v818_v5 = vld [vmem:[%s1302_s1] sm:$0xf]  ;;  %v1034_v37 = vmov 2.0   ;;  %vm452_vm3 = vcmask 1024  }
  0x2c   : > { %v840_v6 = vld [vmem:[%s1302_s1] sm:$0x10]  ;;  %v359_v7 = vpack.c.bf16 %v1193_v4, %v1189_v2  ;;  %v426_v35 = vld [vmem:[%s1303_s2] sm:$0x3]  ;;  %vm506_vm8 = vcmask 1041408   ;;  %vm499_vm9 = vcmask 15360  }
  0x2d   : > { %v819_v8 = vor.u32 %v840_v6, %v818_v5  ;;  %378 = vmatpush.bf16.msra.mxu0 %v358_v3  ;;  %v427_v40 = vld [vmem:[%s1304_s3] sm:$0x3]  ;;  %s842_s23 = sshll.u32 %s1110_s13, 5  ;;  %s352_s18 = scalar_lea.vmem [#allocation5], %s814_s11 }
  0x2e   : > { %392 = vmatpush.bf16.msra.mxu1 %v359_v7  ;;  %s730_s24 = scalar_lea.hbm %s1310_s9, %s842_s23  ;;  %s731_s29 = sshll.u32 %s352_s18, 4  ;;  %s732_s29 = int_to_ptr.vmem [resolvable:$true] %s731_s29 }
  0x2f   : > { %s733_s16 = sshll.u32 %s730_s24, 4  ;;  %s719_s13 = scalar_lea.sflag [#allocation4], %s1175_s14  ;;  %s734_s16 = int_to_ptr.hbm [resolvable:$true] %s733_s16 }
  0x30   : > { %820 = vmatmul.msk.bf16.vlgmr.msra.gmra.mxu0 %vm367_vm0, %v819_v8  ;;  %s978_s11 = sshra.s32 %s734_s16, 4  ;;  %s984_s19 = scalar_lea.hbm %s1310_s9, 64  ;;  %s979_s11 = int_to_ptr.hbm [resolvable:$true] %s978_s11 }
  0x31   : > { %821 = vmatmul.msk.bf16.vlgmr.msra.gmra.mxu1 %vm367_vm0, %v819_v8  ;;  %s980_s17 = scalar_lea.hbm %s979_s11, 32  ;;  %p985_p0 = scmp.lt.s32.totalorder %s979_s11, %s1310_s9 }
  0x32   : > { %p981_p6 = scmp.ne.s32.totalorder %s979_s11, %s980_s17  ;;  %p986_p1 = scmp.lt.s32.totalorder %s984_s19, %s980_s17 }
  0x34   : > { %p982_p9 = pnand %p981_p6, %p1139_p11  ;;  %p987_p3 = por %p986_p1, %p985_p0 }
  0x36   : > { %p983_p13 = pneg %p982_p9 }
  0x38   : > { %p988_p4 = pnand %p987_p3, %p983_p13 }
  0xad   : > { %v380_v9 = vpop.f32.mrf.mxu0 }
  0xae   : > { %v394_v10 = vpop.f32.mrf.mxu1 }
  0xb5   : > { %v382_v11 = vpop.f32.mrf.mxu0 }
  0xb6   : > { %v396_v12 = vpop.f32.mrf.mxu1  ;;  %v400_v13 = vsel %vm399_vm1, %v382_v11, -inf }
  0xb7   : > { %v401_v14 = vsel %vm399_vm1, %v396_v12, -inf }
  0xb8   : > { %v402_v15 = vmax.f32 %v400_v13, %v401_v14  ;;  %v490_v13 = vld [vmem:[%s1305_s4] sm:$0x3] }
  0xba   : > { %403 = vmax.xlane.f32.xlu0 %v402_v15  ;;  %v492_v15 = vld [vmem:[%s1306_s5] sm:$0x3] }
 0x12d   : > { %v404_v16 = vpop.xlane.xlu0 %403 }
 0x12e   : > { %v405_v17 = vsub.f32 %v382_v11, %v404_v16  ;;  %v406_v18 = vsub.f32 %v396_v12, %v404_v16 }
 0x130   : > { %v407_v19 = vmul.f32 1.442695, %v405_v17  ;;  %v409_v20 = vmul.f32 1.442695, %v406_v18 }
 0x132   : > { %900 = vpow2.f32 %v407_v19  ;;  %v495_v19 = vld [vmem:[%s1307_s6] sm:$0xff] }
 0x133   : > { %902 = vpow2.f32 %v409_v20  ;;  %v496_v20 = vld [vmem:[%s1307_s6 + $0x8] sm:$0xff] }
 0x138   : > { %v901_v21 = vpop.eup %900 }
 0x139   : > { %v903_v22 = vpop.eup %902  ;;  %v411_v23 = vsel %vm399_vm1, %v901_v21, 0.0 }
 0x13a   : > { %v412_v24 = vsel %vm399_vm1, %v903_v22, 0.0 }
 0x13b   : > { %v413_v25 = vadd.f32 %v412_v24, %v411_v23 }
 0x13d   : > { %414 = vadd.xlane.f32.xlu0 %v413_v25 }
 0x1b0   : > { %v415_v26 = vpop.xlane.xlu0 %414 }
 0x1b1   : > { %904 = vrcp.f32 %v415_v26 }
 0x1b2   : > { %906 = vrcp.f32 %v1034_v37 }
 0x1b7   : > { %v905_v27 = vpop.eup %904 }
 0x1b8   : > { %v417_v28 = vmul.f32 %v905_v27, %v901_v21  ;;  %v418_v29 = vmul.f32 %v905_v27, %v903_v22  ;;  %v907_v38 = vpop.eup %906  ;;  %v1035_v21 = vmov 0   ;;  %v497_v22 = vld [vmem:[%s1308_s7] sm:$0xff]  ;;  %v498_v27 = vld [vmem:[%s1308_s7 + $0x8] sm:$0xff] }
 0x1b9   : > { %v461_v39 = vmul.f32 2.0, %v907_v38  ;;  %vm465_vm4 = vweird.f32 %v907_v38  ;;  %897 = vset.pattern.permute.xlu1 %v1035_v21  ;;  %898 = vset.pattern.permute.xlu2 %v1035_v21 }
 0x1ba   : > { %v419_v30 = vperm.slane %v417_v28, 0  ;;  %v420_v31 = vperm.slane %v418_v29, 0 }
 0x1bb   : > { %v462_v43 = vsub.f32 1.0, %v461_v39 }
 0x1bc   : > { %v421_v32 = vmul.f32 %v419_v30, %v380_v9  ;;  %v422_v33 = vmul.f32 %v420_v31, %v394_v10 }
 0x1bd   : > { %v463_v46 = vmul.f32 %v907_v38, %v462_v43 }
 0x1be   : > { %v423_v34 = vadd.f32 %v422_v33, %v421_v32 }
 0x1bf   : > { %v464_v49 = vadd.f32 %v907_v38, %v463_v46 }
 0x1c0   : > { %424 = vadd.xlane.f32.xlu1 %v423_v34 }
 0x1c1   : > { %v466_v52 = vsel %vm465_vm4, %v907_v38, %v464_v49 }
 0x233   : > { %v425_v36 = vpop.xlane.xlu1 %424 }
 0x234   : > { %447 = vmatpush.msra.mxu2 %v425_v36 }
 0x235   : > { %822 = vmatmul.msk.f32.vlgmr.msra.gmra.mxu2 %vm428_vm2, %v426_v35 }
 0x2b8   : > { %v449_v41 = vpop.f32.mrf.mxu2 }
 0x2b9   : > { %v450_v42 = vadd.f32 %v449_v41, %v427_v40 }
 0x2bb   : > { %v453_v44 = vsel %vm452_vm3, %v450_v42, 0.0 }
 0x2bc   : > { %v454_v45 = vrot.slane %v453_v44, 4 }
 0x2be   : > { %v455_v47 = vadd.f32 %v454_v45, %v453_v44 }
 0x2c0   : > { %v456_v48 = vrot.slane %v455_v47, 2 }
 0x2c2   : > { %v457_v50 = vadd.f32 %v456_v48, %v455_v47 }
 0x2c4   : > { %v458_v51 = vrot.slane %v457_v50, 1 }
 0x2c6   : > { %v459_v53 = vadd.f32 %v458_v51, %v457_v50 }
 0x2c8   : > { %v467_v54 = vmul.f32 %v466_v52, %v459_v53 }
 0x2ca   : > { %v468_v55 = vsub.f32 %v450_v42, %v467_v54 }
 0x2cc   : > { %v469_v56 = vmul.f32 %v468_v55, %v468_v55 }
 0x2ce   : > { %v470_v57 = vsel %vm452_vm3, %v469_v56, 0.0 }
 0x2cf   : > { %v471_v58 = vrot.slane %v470_v57, 4 }
 0x2d1   : > { %v472_v59 = vadd.f32 %v471_v58, %v470_v57  ;;  %v1036_v57 = vmov 256.0  }
 0x2d3   : > { %v473_v60 = vrot.slane %v472_v59, 2 }
 0x2d5   : > { %v474_v61 = vadd.f32 %v473_v60, %v472_v59 }
 0x2d7   : > { %v475_v62 = vrot.slane %v474_v61, 1 }
 0x2d9   : > { %v476_v63 = vadd.f32 %v475_v62, %v474_v61 }
 0x2db   : > { %v477_v3 = vmul.f32 %v476_v63, %v466_v52 }
 0x2dd   : > { %v478_v5 = vadd.f32 1e-05, %v477_v3 }
 0x2df   : > { %908 = vrsqrt.f32 %v478_v5  ;;  %vm485_vm6 = vweird.f32 %v478_v5 }
 0x2e5   : > { %v909_v6 = vpop.eup %908 }
 0x2e6   : > { %v480_v7 = vmul.f32 %v909_v6, %v478_v5  ;;  %vm486_vm5 = vweird.f32 %v909_v6 }
 0x2e7   : > { %vm487_vm7 = vmor %vm485_vm6, %vm486_vm5 }
 0x2e8   : > { %v481_v8 = vmul.f32 %v909_v6, %v480_v7 }
 0x2ea   : > { %v482_v9 = vmul.f32 0.5, %v481_v8 }
 0x2ec   : > { %v483_v10 = vsub.f32 1.5, %v482_v9 }
 0x2ee   : > { %v484_v11 = vmul.f32 %v909_v6, %v483_v10 }
 0x2f0   : > { %v488_v12 = vsel %vm487_vm7, %v909_v6, %v484_v11 }
 0x2f1   : > { %v489_v14 = vmul.f32 %v488_v12, %v468_v55 }
 0x2f3   : > { %v491_v16 = vmul.f32 %v490_v13, %v489_v14 }
 0x2f5   : > { %v493_v17 = vadd.f32 %v492_v15, %v491_v16 }
 0x2f7   : > { %v494_v18 = vmax.f32 %v493_v17, 0.0 }
 0x2f9   : > { %823 = vmatpush.msk.msra.mxu3 %vm506_vm8, %v494_v18 }
 0x2fa   : > { %824 = vmatmul.msk.f32.vlgmr.msra.gmra.mxu3 %vm499_vm9, %v495_v19 }
 0x302   : > { %825 = vmatmul.msk.f32.gmra.mxu3 %vm499_vm9, %v496_v20 }
 0x37d   : > { %v527_v23 = vpop.f32.mrf.mxu3 }
 0x37e   : > { %v528_v24 = vadd.f32 %v527_v23, %v497_v22 }
 0x380   : > { %v533_v25 = vsub.f32 0.0, %v528_v24 }
 0x382   : > { %v535_v26 = vmul.f32 1.442695, %v533_v25 }
 0x384   : > { %910 = vpow2.f32 %v535_v26 }
 0x385   : > { %v530_v28 = vpop.f32.mrf.mxu3 }
 0x386   : > { %v531_v29 = vadd.f32 %v530_v28, %v498_v27 }
 0x388   : > { %v534_v30 = vsub.f32 0.0, %v531_v29 }
 0x38a   : > { %v911_v31 = vpop.eup %910  ;;  %v537_v32 = vmul.f32 1.442695, %v534_v30 }
 0x38b   : > { %v539_v33 = vadd.f32 1.0, %v911_v31 }
 0x38c   : > { %912 = vpow2.f32 %v537_v32 }
 0x38d   : > { %914 = vrcp.f32 %v539_v33 }
 0x392   : > { %v913_v34 = vpop.eup %912 }
 0x393   : > { %v915_v35 = vpop.eup %914  ;;  %v540_v36 = vadd.f32 1.0, %v913_v34 }
 0x394   : > { %545 = vperm.xlu1 %897, %v915_v35  }
 0x395   : > { %916 = vrcp.f32 %v540_v36 }
 0x39b   : > { %v917_v37 = vpop.eup %916 }
 0x39c   : > { %550 = vperm.xlu2 %898, %v917_v37  }
 0x3f6   : > { %v551_v38 = vpop.permute.xlu2 %550 }
 0x3f7   : > { %v1239_v39 = vmul.f32 %v551_v38, %v1187_v1  ;;  %v1242_v40 = vmul.f32 %v551_v38, %v1193_v4  ;;  %v841_v1 = vld [vmem:[%s1309_s8] sm:$0xff] }
 0x406   : > { %v546_v41 = vpop.permute.xlu1 %545 }
 0x407   : > { %v1245_v42 = vmul.f32 %v546_v41, %v1185_v0  ;;  %v1248_v43 = vmul.f32 %v546_v41, %v1189_v2 }
 0x409   : > { %v559_v44 = vpack.c.bf16 %v1239_v39, %v1245_v42  ;;  %v560_v45 = vpack.c.bf16 %v1242_v40, %v1248_v43 }
 0x40b   : > { %576 = vmatpush.bf16.msrb.mxu2 %v559_v44  ;;  %590 = vmatpush.bf16.msrb.mxu3 %v560_v45 }
 0x40e   : > { %830 = vmatmul.msk.bf16.vlgmr.msrb.gmra.mxu2 %vm367_vm0, %v841_v1  ;;  %831 = vmatmul.msk.bf16.vlgmr.msrb.gmra.mxu3 %vm367_vm0, %v841_v1 }
 0x491   : > { %v578_v0 = vpop.f32.mrf.mxu2  ;;  %v592_v4 = vpop.f32.mrf.mxu3 }
 0x492   : > { %v612_v2 = vadd.f32 %v592_v4, %v578_v0 }
 0x494   : > { %613 = vadd.xlane.f32.xlu0 %v612_v2 }
 0x499   : > { %v580_v46 = vpop.f32.mrf.mxu2  ;;  %v594_v47 = vpop.f32.mrf.mxu3 }
 0x49a   : > { %v597_v48 = vmax.f32 %v580_v46, %v594_v47 }
 0x49c   : > { %598 = vmax.xlane.f32.xlu2 %v597_v48 }
 0x507   : > { %v614_v3 = vpop.xlane.xlu0 %613 }
 0x50f   : > { %v599_v49 = vpop.xlane.xlu2 %598 }
 0x510   : > { %v600_v50 = vsub.f32 %v580_v46, %v599_v49  ;;  %v601_v51 = vsub.f32 %v594_v47, %v599_v49 }
 0x512   : > { %v602_v52 = vmul.f32 1.442695, %v600_v50  ;;  %v604_v53 = vmul.f32 1.442695, %v601_v51 }
 0x514   : > { %918 = vpow2.f32 %v602_v52 }
 0x515   : > { %920 = vpow2.f32 %v604_v53 }
 0x516   : > { %922 = vrcp.f32 %v1036_v57 }
 0x51a   : > { %v919_v54 = vpop.eup %918 }
 0x51b   : > { %v921_v55 = vpop.eup %920 }
 0x51c   : > { %v606_v56 = vadd.f32 %v921_v55, %v919_v54  ;;  %v923_v58 = vpop.eup %922 }
 0x51d   : > { %v616_v59 = vmul.f32 256.0, %v923_v58  ;;  %vm620_vm10 = vweird.f32 %v923_v58 }
 0x51e   : > { %607 = vadd.xlane.f32.xlu0 %v606_v56 }
 0x51f   : > { %v617_v60 = vsub.f32 1.0, %v616_v59 }
 0x521   : > { %v618_v61 = vmul.f32 %v923_v58, %v617_v60 }
 0x523   : > { %v619_v62 = vadd.f32 %v923_v58, %v618_v61 }
 0x525   : > { %v621_v63 = vsel %vm620_vm10, %v923_v58, %v619_v62 }
 0x526   : > { %v622_v5 = vmul.f32 %v621_v63, %v614_v3 }
 0x547   : > { %623 = vxpose.xlu0.b32.start.end [1/1] (short) (narrow) %v622_v5, 8 }
 0x591   : > { %v608_v6 = vpop.xlane.xlu0 %607 }
 0x592   : > { %924 = vrcp.f32 %v608_v6 }
 0x598   : > { %v925_v7 = vpop.eup %924 }
 0x599   : > { %v610_v8 = vmul.f32 %v925_v7, %v919_v54  ;;  %v611_v9 = vmul.f32 %v925_v7, %v921_v55 }
 0x59b   : > { %673 = vmatpush.msrb.mxu0 %v610_v8  ;;  %693 = vmatpush.msrb.mxu1 %v611_v9 }
 0x5ae   : > { %899 = vset.pattern.permute.xlu0 %v1035_v21 }
 0x5eb   : > { %v639_v10 = vpop.trf.xlu0 }
 0x5ec   : > { %832 = vmatmul.msk.f32.vlgmr.msrb.gmra.mxu0 %vm428_vm2, %v639_v10  ;;  %833 = vmatmul.msk.f32.vlgmr.msrb.gmra.mxu1 %vm428_vm2, %v639_v10 }
 0x669   : > { %v675_v11 = vpop.f32.mrf.mxu0  ;;  %v695_v12 = vpop.f32.mrf.mxu1 }
 0x66a   : > { %v698_v13 = vsub.f32 0.0, %v675_v11  ;;  %v699_v14 = vsub.f32 0.0, %v695_v12 }
 0x66c   : > { %v700_v15 = vmul.f32 1.442695, %v698_v13  ;;  %v702_v16 = vmul.f32 1.442695, %v699_v14 }
 0x66e   : > { %926 = vpow2.f32 %v700_v15 }
 0x66f   : > { %928 = vpow2.f32 %v702_v16 }
 0x674   : > { %v927_v17 = vpop.eup %926 }
 0x675   : > { %v929_v18 = vpop.eup %928  ;;  %v704_v19 = vadd.f32 1.0, %v927_v17 }
 0x676   : > { %v705_v20 = vadd.f32 1.0, %v929_v18 }
 0x677   : > { %930 = vrcp.f32 %v704_v19 }
 0x678   : > { %932 = vrcp.f32 %v705_v20 }
 0x67d   : > { %v931_v21 = vpop.eup %930 }
 0x67e   : > { %v933_v22 = vpop.eup %932  ;;  %v708_v23 = vperm.slane %v931_v21, 0 }
 0x67f   : > { %v709_v24 = vperm.slane %v933_v22, 0 }
 0x680   : > { %v710_v25 = vmul.f32 %v708_v23, %v1245_v42  ;;  %v712_v26 = vmul.f32 %v708_v23, %v1239_v39 }
 0x681   : > { %v711_v27 = vmul.f32 %v709_v24, %v1248_v43  ;;  %v713_v28 = vmul.f32 %v709_v24, %v1242_v40 }
 0x682   : > { %714 = vst [vmem:[%s352_s18] sm:$0xff] %v710_v25 }
 0x683   : > { %716 = vst [vmem:[%s352_s18 + $0x10] sm:$0xff] %v712_v26 }
 0x684   : > { %715 = vst [vmem:[%s352_s18 + $0x8] sm:$0xff] %v711_v27 }
 0x685   : > { %717 = vst [vmem:[%s352_s18 + $0x18] sm:$0xff] %v713_v28 }
 0x686   : > { %991 = shalt.err (!%p988_p4)
}
 0x687   : > { %s1037_s14 = smov 256   ;;  %s1038_s23 = smov 16  }
 0x688   : > { %845 = dma.vmem_to_hbm [thread:$0]  (%p1139_p11), %s732_s29, 512, %s734_s16, %s719_s13, %s1037_s14, %s1037_s14, %s1038_s23  }
 0x689 PF: > { %s748_s28 = sand.u32 1, %s1018_s30   ;;  %p1322_p7 = scmp.ge.s32.totalorder %s1030_s12, 2 }
 0x68a   : > { %s749_s15 = scalar_lea.sflag [#allocation4], %s748_s28 }
 0x68b   : > { %p852_p5 = pnand %p1322_p7, %p1143_p12 }
 0x68d   : > { %p853_p8 = pneg %p852_p5 }
 0x68f   : > { %1013 = dma.done.wait (%p853_p8), %s749_s15, 512  }
 0x690   : > { %1015 = vsyncadd (%p853_p8), %s749_s15, 4294966784  ;;  %s1323_s12 = sld [smem:[#allocation9_spill]]  ;;  %s1326_s30 = smov %s1022_s10 }
 0x691   : > { %s1324_s24 = sld [smem:[#allocation8_spill]] }
 0x692   : > { %s1325_s11 = sld [smem:[#allocation10_spill]] }
 0x696   : > { %p22_p10 = scmp.ge.s32.totalorder %s1323_s12, 4  }
 0x697   : > { %s1327_s10 = smov %s1324_s24 }
 0x698   :  { %24 = sbr.rel (!%p22_p10) target bundleno = 5 (0x5), region = 101 }
 0x69d   :  { %755 = vsyncpa [#allocation3], 1 }
 0x69e   :  { %757 = vsyncpa [#allocation3 + $0x1], 1 }
 0x69f   :  { %758 = vsyncpa [#allocation4], 1 }
 0x6a0   :  { %760 = vsyncpa [#allocation4 + $0x1], 1 }

</bundles_post_ra>
